<compile_context>
chip_gen: v7x
topology: tpu7x:2x2x1
jax: 0.10.0
libtpu: 0.0.40
codegen_flags: <defaults>
</compile_context>

<pallas_src>
import jax
import jax.numpy as jnp
from jax.experimental import pallas as pl
from jax.experimental.pallas import tpu as pltpu

ATTN_SLOPE = 0.2    # GATConv internal leaky_relu negative_slope (DGL default)
ACT_SLOPE = 0.01    # F.leaky_relu default negative_slope
PAD = 128           # lane-dense channel padding for hidden / output dims
IN_DIM = 3
HID_DIM = 64
OUT_DIM = 3
NUM_LAYERS = 3
EL_COL = PAD - 2    # column of X@W_aug holding el[j] = z[j] . a_l  (src logit)
ER_COL = PAD - 1    # column of X@W_aug holding er[i] = z[i] . a_r  (dst logit)


def _gat_layer(adj, x, w, b, ones_col, *, apply_act):
    """Single-head GATConv with a_l/a_r folded into two extra columns of w.

    adj:      [N, N] {0,1} mask (row i = sources of destination i)
    x:        [N, K] node features (K = real contraction width, no padding)
    w:        [K, PAD] projection; cols [:c_out] real, col EL_COL = W@a_l,
              col ER_COL = W@a_r, rest zero
    b:        [1, PAD] bias (zero outside the real c_out columns)
    ones_col: [N, 1] constant ones (hoisted once per kernel invocation)
    """
    # Projection (MXU, f32 accumulation). z[:, EL_COL] = el, z[:, ER_COL] = er.
    z = jnp.dot(x, w, preferred_element_type=jnp.float32)                # [N, PAD]
    er_col = z[:, ER_COL:ER_COL + 1]                                     # [N, 1]
    el_col = z[:, EL_COL:EL_COL + 1]                                     # [N, 1]
    # Spread el along lanes: el_mat[i, j] = el[j] via a K=1 ones outer product.
    el_mat = jax.lax.dot_general(ones_col, el_col,
                                 (((1,), (1,)), ((), ())),
                                 preferred_element_type=jnp.float32)     # [N, N]
    e = er_col + el_mat                                                  # e[i,j] = er[i] + el[j]
    e = jnp.where(e >= 0, e, ATTN_SLOPE * e)                             # attention leaky_relu
    # Single masking pass before the row max; masked entries underflow to 0 in exp.
    e = jnp.where(adj > 0, e, jnp.float32(-1e30))
    m = jnp.max(e, axis=-1, keepdims=True)                               # finite (self-loops)
    p = jnp.exp(e - m)                                                   # [N, N], masked -> 0
    inv = 1.0 / jnp.sum(p, axis=-1, keepdims=True)                       # [N, 1], denom >= 1
    # Aggregate first, normalize after: out[i] = inv[i] * sum_j p[i,j] z[j] + b.
    agg = jnp.dot(p, z, preferred_element_type=jnp.float32)              # [N, PAD]
    out = agg * inv + b
    if apply_act:
        out = jnp.where(out >= 0, out, ACT_SLOPE * out)                  # F.leaky_relu
    return out


def _gat_net_kernel(adj_ref, x_ref, w_ref, b_ref, o_ref):
    adj = adj_ref[0]                       # [N, N]
    x = x_ref[0]                           # [N, IN_DIM]
    n = adj.shape[0]
    ones_col = jnp.ones((n, 1), jnp.float32)     # hoisted, reused by all layers
    b_all = b_ref[...]                     # [3, PAD]

    w1 = w_ref[0][:IN_DIM, :]              # [3,  PAD]
    w2 = w_ref[1]                          # [64, PAD]
    w3 = w_ref[2]                          # [64, PAD]

    h = _gat_layer(adj, x, w1, b_all[0:1, :], ones_col, apply_act=True)
    h = _gat_layer(adj, h[:, :HID_DIM], w2, b_all[1:2, :], ones_col, apply_act=True)
    h = _gat_layer(adj, h[:, :HID_DIM], w3, b_all[2:3, :], ones_col, apply_act=False)
    o_ref[0] = h.astype(o_ref.dtype)


def gat_net_forward(adj, features, w_packed, b_packed):
    """gatNet.forward: leaky_relu(GAT1), leaky_relu(GAT2), GAT3, head-0 slice.

    Accepts a single graph (adj [N,N], features [N,3]) or a batch of graphs
    (adj [B,N,N], features [B,N,3]); each graph is one grid step.
    """
    squeeze = adj.ndim == 2
    if squeeze:
        adj = adj[None]
        features = features[None]
    b, n = adj.shape[0], adj.shape[1]

    out_pad = pl.pallas_call(
        _gat_net_kernel,
        out_shape=jax.ShapeDtypeStruct((b, n, PAD), jnp.float32),
        grid=(b,),
        in_specs=[
            pl.BlockSpec((1, n, n), lambda i: (i, 0, 0)),                 # adj, per graph
            pl.BlockSpec((1, n, IN_DIM), lambda i: (i, 0, 0)),            # features, per graph
            pl.BlockSpec((NUM_LAYERS, HID_DIM, PAD), lambda i: (0, 0, 0)),  # packed weights (resident)
            pl.BlockSpec((NUM_LAYERS, PAD), lambda i: (0, 0)),            # packed biases (resident)
        ],
        out_specs=pl.BlockSpec((1, n, PAD), lambda i: (i, 0, 0)),
        compiler_params=pltpu.CompilerParams(
            dimension_semantics=("parallel",)),
    )(adj, features, w_packed, b_packed)

    # heads == 1 -> torch's x[:, 0, :] is just the first OUT_DIM (unpadded) channels.
    out = out_pad[..., :OUT_DIM]
    return out[0] if squeeze else out


def init_gat_layer(key, c_in, c_out):
    """DGL-style xavier_normal(gain=sqrt(2)) init, zero bias (unpacked)."""
    kw, kl, kr = jax.random.split(key, 3)
    gain = 2.0 ** 0.5
    std_w = gain * (2.0 / (c_in + c_out)) ** 0.5
    std_a = gain * (2.0 / (1 + c_out)) ** 0.5
    w = std_w * jax.random.normal(kw, (c_in, c_out), jnp.float32)
    a_l = std_a * jax.random.normal(kl, (c_out,), jnp.float32)
    a_r = std_a * jax.random.normal(kr, (c_out,), jnp.float32)
    bias = jnp.zeros((c_out,), jnp.float32)
    return w, a_l, a_r, bias


def make_params(key):
    dims = [(IN_DIM, HID_DIM),   # layer1: 3  -> 64
            (HID_DIM, HID_DIM),  # layer2: 64 -> 64
            (HID_DIM, OUT_DIM)]  # layer3: 64 -> 3
    keys = jax.random.split(key, len(dims))
    return [init_gat_layer(k, ci, co) for k, (ci, co) in zip(keys, dims)]


def pack_params(params):
    """Pack all layer params into two buffers; fold a_l/a_r into extra W columns."""
    w_packed = jnp.zeros((NUM_LAYERS, HID_DIM, PAD), jnp.float32)
    b_packed = jnp.zeros((NUM_LAYERS, PAD), jnp.float32)
    for layer, (w, a_l, a_r, bias) in enumerate(params):
        c_in, c_out = w.shape
        w_packed = w_packed.at[layer, :c_in, :c_out].set(w)
        w_packed = w_packed.at[layer, :c_in, EL_COL].set(w @ a_l)   # el[j] = x @ (W a_l)
        w_packed = w_packed.at[layer, :c_in, ER_COL].set(w @ a_r)   # er[i] = x @ (W a_r)
        b_packed = b_packed.at[layer, :c_out].set(bias)
    return w_packed, b_packed


def gat_net_reference(adj, features, params):
    """Pure-JAX f32 reference (unpacked params) for correctness checking."""
    def layer(h, w, a_l, a_r, bias, act):
        z = h @ w
        el = z @ a_l
        er = z @ a_r
        e = er[:, None] + el[None, :]
        e = jnp.where(e >= 0, e, ATTN_SLOPE * e)
        e = jnp.where(adj > 0, e, -jnp.inf)
        alpha = jax.nn.softmax(e, axis=-1)
        out = alpha @ z + bias[None, :]
        if act:
            out = jnp.where(out >= 0, out, ACT_SLOPE * out)
        return out

    h = features
    for i, (w, a_l, a_r, bias) in enumerate(params):
        h = layer(h, w, a_l, a_r, bias, act=(i < len(params) - 1))
    return h


def make_graph(key, n):
    """Random undirected graph as a dense {0,1} adjacency with self-loops."""
    a = (jax.random.uniform(key, (n, n)) < 0.3).astype(jnp.float32)
    a = jnp.maximum(a, a.T)                              # symmetrize
    a = jnp.maximum(a, jnp.eye(n, dtype=jnp.float32))    # self-loops (in-degree > 0)
    return a


if __name__ == "__main__":
    key = jax.random.PRNGKey(0)
    k_feat, k_graph, k_params = jax.random.split(key, 3)

    B, N = 2, 16                                                  # graphs, nodes per graph
    features = jax.random.normal(k_feat, (B, N, IN_DIM), jnp.float32)
    adj = jnp.stack([make_graph(k, N) for k in jax.random.split(k_graph, B)])
    params = make_params(k_params)
    w_packed, b_packed = pack_params(params)

    out = gat_net_forward(adj, features, w_packed, b_packed)
    out = jax.block_until_ready(out)
    assert out.shape == (B, N, OUT_DIM), out.shape
    assert bool(jnp.all(jnp.isfinite(out)))

    ref = jax.vmap(lambda a, f: gat_net_reference(a, f, params))(adj, features)
    max_err = float(jnp.max(jnp.abs(out - ref)))
    assert jnp.allclose(out, ref, atol=2e-3, rtol=2e-3), max_err

    print("KERNEL_OK")
</pallas_src>

<mosaic_0001>
module attributes {stable_mosaic.version = 11 : i64} {
  func.func @_gat_net_kernel(%arg0: i32, %arg1: memref<1x16x16xf32, #tpu.memory_space<vmem>>, %arg2: memref<1x16x3xf32, #tpu.memory_space<vmem>>, %arg3: memref<3x64x128xf32, #tpu.memory_space<vmem>>, %arg4: memref<3x128xf32, #tpu.memory_space<vmem>>, %arg5: memref<1x16x128xf32, #tpu.memory_space<vmem>>) attributes {dimension_semantics = [#tpu.dimension_semantics<parallel>], iteration_bounds = array<i64: 2>, scalar_prefetch = 0 : i64, scratch_operands = 0 : i64, tpu.core_type = #tpu.core_type<tc>, window_params = [{transform_indices = @transform_0, window_bounds = array<i64: 1, 16, 16>}, {transform_indices = @transform_1, window_bounds = array<i64: 1, 16, 3>}, {pipeline_mode = #tpu.pipeline_mode<synchronous>, transform_indices = @transform_2, window_bounds = array<i64: 3, 64, 128>}, {pipeline_mode = #tpu.pipeline_mode<synchronous>, transform_indices = @transform_3, window_bounds = array<i64: 3, 128>}, {transform_indices = @transform_4, window_bounds = array<i64: 1, 16, 128>}]} {
    %c0 = arith.constant 0 : index
    %c0_0 = arith.constant 0 : index
    %c0_1 = arith.constant 0 : index
    %0 = vector.load %arg1[%c0, %c0_0, %c0_1] : memref<1x16x16xf32, #tpu.memory_space<vmem>>, vector<1x16x16xf32>
    %1 = vector.shape_cast %0 : vector<1x16x16xf32> to vector<16x16xf32>
    %c0_2 = arith.constant 0 : index
    %c0_3 = arith.constant 0 : index
    %c0_4 = arith.constant 0 : index
    %2 = vector.load %arg2[%c0_2, %c0_3, %c0_4] : memref<1x16x3xf32, #tpu.memory_space<vmem>>, vector<1x16x3xf32>
    %3 = vector.shape_cast %2 : vector<1x16x3xf32> to vector<16x3xf32>
    %cst = arith.constant 1.000000e+00 : f32
    %4 = vector.broadcast %cst : f32 to vector<16x1xf32>
    %c0_5 = arith.constant 0 : index
    %c0_6 = arith.constant 0 : index
    %5 = vector.load %arg4[%c0_5, %c0_6] : memref<3x128xf32, #tpu.memory_space<vmem>>, vector<3x128xf32>
    %c0_7 = arith.constant 0 : index
    %c0_8 = arith.constant 0 : index
    %c0_9 = arith.constant 0 : index
    %6 = vector.load %arg3[%c0_7, %c0_8, %c0_9] : memref<3x64x128xf32, #tpu.memory_space<vmem>>, vector<1x64x128xf32>
    %7 = vector.shape_cast %6 : vector<1x64x128xf32> to vector<64x128xf32>
    %8 = vector.extract_strided_slice %7 {offsets = [0, 0], sizes = [3, 128], strides = [1, 1]} : vector<64x128xf32> to vector<3x128xf32>
    %c1 = arith.constant 1 : index
    %c0_10 = arith.constant 0 : index
    %c0_11 = arith.constant 0 : index
    %9 = vector.load %arg3[%c1, %c0_10, %c0_11] : memref<3x64x128xf32, #tpu.memory_space<vmem>>, vector<1x64x128xf32>
    %10 = vector.shape_cast %9 : vector<1x64x128xf32> to vector<64x128xf32>
    %c2 = arith.constant 2 : index
    %c0_12 = arith.constant 0 : index
    %c0_13 = arith.constant 0 : index
    %11 = vector.load %arg3[%c2, %c0_12, %c0_13] : memref<3x64x128xf32, #tpu.memory_space<vmem>>, vector<1x64x128xf32>
    %12 = vector.shape_cast %11 : vector<1x64x128xf32> to vector<64x128xf32>
    %13 = vector.extract_strided_slice %5 {offsets = [0, 0], sizes = [1, 128], strides = [1, 1]} : vector<3x128xf32> to vector<1x128xf32>
    %cst_14 = arith.constant dense<0.000000e+00> : vector<16x128xf32>
    %14 = tpu.matmul %3, %8, %cst_14 {dimension_numbers = #tpu.dot_dimension_numbers<[1], [0], [0], [1], [0, 0, 1, 1], [], []>} : vector<16x3xf32>, vector<3x128xf32>, vector<16x128xf32> -> vector<16x128xf32>
    %15 = vector.extract_strided_slice %14 {offsets = [0, 127], sizes = [16, 1], strides = [1, 1]} : vector<16x128xf32> to vector<16x1xf32>
    %16 = vector.extract_strided_slice %14 {offsets = [0, 126], sizes = [16, 1], strides = [1, 1]} : vector<16x128xf32> to vector<16x1xf32>
    %cst_15 = arith.constant dense<0.000000e+00> : vector<16x16xf32>
    %17 = tpu.matmul %4, %16, %cst_15 {dimension_numbers = #tpu.dot_dimension_numbers<[1], [1], [0], [0], [0, 0, 1, 0], [], []>} : vector<16x1xf32>, vector<16x1xf32>, vector<16x16xf32> -> vector<16x16xf32>
    %18 = vector.broadcast %15 : vector<16x1xf32> to vector<16x16xf32>
    %19 = arith.addf %18, %17 : vector<16x16xf32>
    %cst_16 = arith.constant 0.000000e+00 : f32
    %20 = vector.broadcast %cst_16 : f32 to vector<16x16xf32>
    %21 = arith.cmpf oge, %19, %20 : vector<16x16xf32>
    %cst_17 = arith.constant 2.000000e-01 : f32
    %22 = vector.broadcast %cst_17 : f32 to vector<16x16xf32>
    %23 = arith.mulf %22, %19 : vector<16x16xf32>
    %24 = arith.select %21, %19, %23 : vector<16x16xi1>, vector<16x16xf32>
    %cst_18 = arith.constant 0.000000e+00 : f32
    %25 = vector.broadcast %cst_18 : f32 to vector<16x16xf32>
    %26 = arith.cmpf ogt, %1, %25 : vector<16x16xf32>
    %cst_19 = arith.constant -1.000000e+30 : f32
    %27 = vector.broadcast %cst_19 : f32 to vector<16x16xf32>
    %28 = arith.select %26, %24, %27 : vector<16x16xi1>, vector<16x16xf32>
    %cst_20 = arith.constant dense<0xFF800000> : vector<16xf32>
    %29 = vector.multi_reduction <maximumf>, %28, %cst_20 [1] : vector<16x16xf32> to vector<16xf32>
    %30 = vector.shape_cast %29 : vector<16xf32> to vector<16x1xf32>
    %31 = vector.broadcast %30 : vector<16x1xf32> to vector<16x16xf32>
    %32 = arith.subf %28, %31 : vector<16x16xf32>
    %33 = math.exp %32 : vector<16x16xf32>
    %cst_21 = arith.constant dense<0.000000e+00> : vector<16xf32>
    %34 = vector.multi_reduction <add>, %33, %cst_21 [1] : vector<16x16xf32> to vector<16xf32>
    %35 = vector.shape_cast %34 : vector<16xf32> to vector<16x1xf32>
    %cst_22 = arith.constant 1.000000e+00 : f32
    %36 = vector.broadcast %cst_22 : f32 to vector<16x1xf32>
    %37 = arith.divf %36, %35 : vector<16x1xf32>
    %cst_23 = arith.constant dense<0.000000e+00> : vector<16x128xf32>
    %38 = tpu.matmul %33, %14, %cst_23 {dimension_numbers = #tpu.dot_dimension_numbers<[1], [0], [0], [1], [0, 0, 1, 1], [], []>} : vector<16x16xf32>, vector<16x128xf32>, vector<16x128xf32> -> vector<16x128xf32>
    %39 = vector.broadcast %37 : vector<16x1xf32> to vector<16x128xf32>
    %40 = arith.mulf %38, %39 : vector<16x128xf32>
    %41 = vector.broadcast %13 : vector<1x128xf32> to vector<16x128xf32>
    %42 = arith.addf %40, %41 : vector<16x128xf32>
    %cst_24 = arith.constant 0.000000e+00 : f32
    %43 = vector.broadcast %cst_24 : f32 to vector<16x128xf32>
    %44 = arith.cmpf oge, %42, %43 : vector<16x128xf32>
    %cst_25 = arith.constant 0.00999999977 : f32
    %45 = vector.broadcast %cst_25 : f32 to vector<16x128xf32>
    %46 = arith.mulf %45, %42 : vector<16x128xf32>
    %47 = arith.select %44, %42, %46 : vector<16x128xi1>, vector<16x128xf32>
    %48 = vector.extract_strided_slice %47 {offsets = [0, 0], sizes = [16, 64], strides = [1, 1]} : vector<16x128xf32> to vector<16x64xf32>
    %49 = vector.extract_strided_slice %5 {offsets = [1, 0], sizes = [1, 128], strides = [1, 1]} : vector<3x128xf32> to vector<1x128xf32>
    %cst_26 = arith.constant dense<0.000000e+00> : vector<16x128xf32>
    %50 = tpu.matmul %48, %10, %cst_26 {dimension_numbers = #tpu.dot_dimension_numbers<[1], [0], [0], [1], [0, 0, 1, 1], [], []>} : vector<16x64xf32>, vector<64x128xf32>, vector<16x128xf32> -> vector<16x128xf32>
    %51 = vector.extract_strided_slice %50 {offsets = [0, 127], sizes = [16, 1], strides = [1, 1]} : vector<16x128xf32> to vector<16x1xf32>
    %52 = vector.extract_strided_slice %50 {offsets = [0, 126], sizes = [16, 1], strides = [1, 1]} : vector<16x128xf32> to vector<16x1xf32>
    %cst_27 = arith.constant dense<0.000000e+00> : vector<16x16xf32>
    %53 = tpu.matmul %4, %52, %cst_27 {dimension_numbers = #tpu.dot_dimension_numbers<[1], [1], [0], [0], [0, 0, 1, 0], [], []>} : vector<16x1xf32>, vector<16x1xf32>, vector<16x16xf32> -> vector<16x16xf32>
    %54 = vector.broadcast %51 : vector<16x1xf32> to vector<16x16xf32>
    %55 = arith.addf %54, %53 : vector<16x16xf32>
    %cst_28 = arith.constant 0.000000e+00 : f32
    %56 = vector.broadcast %cst_28 : f32 to vector<16x16xf32>
    %57 = arith.cmpf oge, %55, %56 : vector<16x16xf32>
    %cst_29 = arith.constant 2.000000e-01 : f32
    %58 = vector.broadcast %cst_29 : f32 to vector<16x16xf32>
    %59 = arith.mulf %58, %55 : vector<16x16xf32>
    %60 = arith.select %57, %55, %59 : vector<16x16xi1>, vector<16x16xf32>
    %cst_30 = arith.constant 0.000000e+00 : f32
    %61 = vector.broadcast %cst_30 : f32 to vector<16x16xf32>
    %62 = arith.cmpf ogt, %1, %61 : vector<16x16xf32>
    %cst_31 = arith.constant -1.000000e+30 : f32
    %63 = vector.broadcast %cst_31 : f32 to vector<16x16xf32>
    %64 = arith.select %62, %60, %63 : vector<16x16xi1>, vector<16x16xf32>
    %cst_32 = arith.constant dense<0xFF800000> : vector<16xf32>
    %65 = vector.multi_reduction <maximumf>, %64, %cst_32 [1] : vector<16x16xf32> to vector<16xf32>
    %66 = vector.shape_cast %65 : vector<16xf32> to vector<16x1xf32>
    %67 = vector.broadcast %66 : vector<16x1xf32> to vector<16x16xf32>
    %68 = arith.subf %64, %67 : vector<16x16xf32>
    %69 = math.exp %68 : vector<16x16xf32>
    %cst_33 = arith.constant dense<0.000000e+00> : vector<16xf32>
    %70 = vector.multi_reduction <add>, %69, %cst_33 [1] : vector<16x16xf32> to vector<16xf32>
    %71 = vector.shape_cast %70 : vector<16xf32> to vector<16x1xf32>
    %cst_34 = arith.constant 1.000000e+00 : f32
    %72 = vector.broadcast %cst_34 : f32 to vector<16x1xf32>
    %73 = arith.divf %72, %71 : vector<16x1xf32>
    %cst_35 = arith.constant dense<0.000000e+00> : vector<16x128xf32>
    %74 = tpu.matmul %69, %50, %cst_35 {dimension_numbers = #tpu.dot_dimension_numbers<[1], [0], [0], [1], [0, 0, 1, 1], [], []>} : vector<16x16xf32>, vector<16x128xf32>, vector<16x128xf32> -> vector<16x128xf32>
    %75 = vector.broadcast %73 : vector<16x1xf32> to vector<16x128xf32>
    %76 = arith.mulf %74, %75 : vector<16x128xf32>
    %77 = vector.broadcast %49 : vector<1x128xf32> to vector<16x128xf32>
    %78 = arith.addf %76, %77 : vector<16x128xf32>
    %cst_36 = arith.constant 0.000000e+00 : f32
    %79 = vector.broadcast %cst_36 : f32 to vector<16x128xf32>
    %80 = arith.cmpf oge, %78, %79 : vector<16x128xf32>
    %cst_37 = arith.constant 0.00999999977 : f32
    %81 = vector.broadcast %cst_37 : f32 to vector<16x128xf32>
    %82 = arith.mulf %81, %78 : vector<16x128xf32>
    %83 = arith.select %80, %78, %82 : vector<16x128xi1>, vector<16x128xf32>
    %84 = vector.extract_strided_slice %83 {offsets = [0, 0], sizes = [16, 64], strides = [1, 1]} : vector<16x128xf32> to vector<16x64xf32>
    %85 = vector.extract_strided_slice %5 {offsets = [2, 0], sizes = [1, 128], strides = [1, 1]} : vector<3x128xf32> to vector<1x128xf32>
    %cst_38 = arith.constant dense<0.000000e+00> : vector<16x128xf32>
    %86 = tpu.matmul %84, %12, %cst_38 {dimension_numbers = #tpu.dot_dimension_numbers<[1], [0], [0], [1], [0, 0, 1, 1], [], []>} : vector<16x64xf32>, vector<64x128xf32>, vector<16x128xf32> -> vector<16x128xf32>
    %87 = vector.extract_strided_slice %86 {offsets = [0, 127], sizes = [16, 1], strides = [1, 1]} : vector<16x128xf32> to vector<16x1xf32>
    %88 = vector.extract_strided_slice %86 {offsets = [0, 126], sizes = [16, 1], strides = [1, 1]} : vector<16x128xf32> to vector<16x1xf32>
    %cst_39 = arith.constant dense<0.000000e+00> : vector<16x16xf32>
    %89 = tpu.matmul %4, %88, %cst_39 {dimension_numbers = #tpu.dot_dimension_numbers<[1], [1], [0], [0], [0, 0, 1, 0], [], []>} : vector<16x1xf32>, vector<16x1xf32>, vector<16x16xf32> -> vector<16x16xf32>
    %90 = vector.broadcast %87 : vector<16x1xf32> to vector<16x16xf32>
    %91 = arith.addf %90, %89 : vector<16x16xf32>
    %cst_40 = arith.constant 0.000000e+00 : f32
    %92 = vector.broadcast %cst_40 : f32 to vector<16x16xf32>
    %93 = arith.cmpf oge, %91, %92 : vector<16x16xf32>
    %cst_41 = arith.constant 2.000000e-01 : f32
    %94 = vector.broadcast %cst_41 : f32 to vector<16x16xf32>
    %95 = arith.mulf %94, %91 : vector<16x16xf32>
    %96 = arith.select %93, %91, %95 : vector<16x16xi1>, vector<16x16xf32>
    %cst_42 = arith.constant 0.000000e+00 : f32
    %97 = vector.broadcast %cst_42 : f32 to vector<16x16xf32>
    %98 = arith.cmpf ogt, %1, %97 : vector<16x16xf32>
    %cst_43 = arith.constant -1.000000e+30 : f32
    %99 = vector.broadcast %cst_43 : f32 to vector<16x16xf32>
    %100 = arith.select %98, %96, %99 : vector<16x16xi1>, vector<16x16xf32>
    %cst_44 = arith.constant dense<0xFF800000> : vector<16xf32>
    %101 = vector.multi_reduction <maximumf>, %100, %cst_44 [1] : vector<16x16xf32> to vector<16xf32>
    %102 = vector.shape_cast %101 : vector<16xf32> to vector<16x1xf32>
    %103 = vector.broadcast %102 : vector<16x1xf32> to vector<16x16xf32>
    %104 = arith.subf %100, %103 : vector<16x16xf32>
    %105 = math.exp %104 : vector<16x16xf32>
    %cst_45 = arith.constant dense<0.000000e+00> : vector<16xf32>
    %106 = vector.multi_reduction <add>, %105, %cst_45 [1] : vector<16x16xf32> to vector<16xf32>
    %107 = vector.shape_cast %106 : vector<16xf32> to vector<16x1xf32>
    %cst_46 = arith.constant 1.000000e+00 : f32
    %108 = vector.broadcast %cst_46 : f32 to vector<16x1xf32>
    %109 = arith.divf %108, %107 : vector<16x1xf32>
    %cst_47 = arith.constant dense<0.000000e+00> : vector<16x128xf32>
    %110 = tpu.matmul %105, %86, %cst_47 {dimension_numbers = #tpu.dot_dimension_numbers<[1], [0], [0], [1], [0, 0, 1, 1], [], []>} : vector<16x16xf32>, vector<16x128xf32>, vector<16x128xf32> -> vector<16x128xf32>
    %111 = vector.broadcast %109 : vector<16x1xf32> to vector<16x128xf32>
    %112 = arith.mulf %110, %111 : vector<16x128xf32>
    %113 = vector.broadcast %85 : vector<1x128xf32> to vector<16x128xf32>
    %114 = arith.addf %112, %113 : vector<16x128xf32>
    %c0_48 = arith.constant 0 : index
    %c0_49 = arith.constant 0 : index
    %c0_50 = arith.constant 0 : index
    %115 = vector.load %arg5[%c0_48, %c0_49, %c0_50] : memref<1x16x128xf32, #tpu.memory_space<vmem>>, vector<1x16x128xf32>
    %116 = vector.shape_cast %115 : vector<1x16x128xf32> to vector<16x128xf32>
    %117 = vector.shape_cast %114 : vector<16x128xf32> to vector<1x16x128xf32>
    tpu.vector_store %arg5[%c0_48, %c0_49, %c0_50], %117 {strides = array<i32>} : memref<1x16x128xf32, #tpu.memory_space<vmem>>, vector<1x16x128xf32>,
    return
  }
  func.func @transform_0(%arg0: i32) -> (i32, i32, i32) {
    %c0_i32 = arith.constant 0 : i32
    %c0_i32_0 = arith.constant 0 : i32
    %c0_i32_1 = arith.constant 0 : i32
    return %arg0, %c0_i32, %c0_i32_0 : i32, i32, i32
  }
  func.func @transform_1(%arg0: i32) -> (i32, i32, i32) {
    %c0_i32 = arith.constant 0 : i32
    %c0_i32_0 = arith.constant 0 : i32
    %c0_i32_1 = arith.constant 0 : i32
    return %arg0, %c0_i32, %c0_i32_0 : i32, i32, i32
  }
  func.func @transform_2(%arg0: i32) -> (i32, i32, i32) {
    %c0_i32 = arith.constant 0 : i32
    %c0_i32_0 = arith.constant 0 : i32
    %c0_i32_1 = arith.constant 0 : i32
    %c0_i32_2 = arith.constant 0 : i32
    return %c0_i32, %c0_i32_0, %c0_i32_1 : i32, i32, i32
  }
  func.func @transform_3(%arg0: i32) -> (i32, i32) {
    %c0_i32 = arith.constant 0 : i32
    %c0_i32_0 = arith.constant 0 : i32
    %c0_i32_1 = arith.constant 0 : i32
    return %c0_i32, %c0_i32_0 : i32, i32
  }
  func.func @transform_4(%arg0: i32) -> (i32, i32, i32) {
    %c0_i32 = arith.constant 0 : i32
    %c0_i32_0 = arith.constant 0 : i32
    %c0_i32_1 = arith.constant 0 : i32
    return %arg0, %c0_i32, %c0_i32_0 : i32, i32, i32
  }
}

</mosaic_0001>

<bundles_post_ra>
// kernel: tpu_custom_call.1
= control target key start
LH: loop header
LB: loop body
LE: loop exit
PB: predicated region body
PF: predicated region fallthrough
CT: control target
= control target key end

     0   :  { %9 = vsyncpa [#allocation3], 0  ;;  %s1967_s0 = inlined_call_operand.vmem [shape: f32[2,16,16], index: 0, kind: input, shape index: {}]   ;;  %s1968_s1 = inlined_call_operand.vmem [shape: f32[2,16,3], index: 1, kind: input, shape index: {}]   ;;  %s1969_s2 = inlined_call_operand.hbm [shape: f32[3,64,128], index: 2, kind: input, shape index: {}]   ;;  %s1970_s3 = inlined_call_operand.vmem [shape: f32[3,128], index: 3, kind: input, shape index: {}]   ;;  %s1971_s4 = inlined_call_operand.hbm [shape: f32[2,16,128], index: 4, kind: output, shape index: {}]  }
   0x1   :  { %10 = vsyncpa [#allocation4], 0 }
   0x2   :  { %12 = vsyncpa [#allocation4 + $0x1], 0  ;;  %s1733_s15 = smov 0   ;;  %s1735_s16 = smov 0  }
   0x3   :  { %s1737_s17 = smov 0   ;;  %s1739_s18 = smov 0  }
   0x4 LB: > { %s1754_s19 = sadd.s32 4294967295, %s1697_s18   ;;  %s1267_s20 = sadd.s32 4294967294, %s1697_s18   ;;  %s1697_s18 = sphi %s1739_s18, %s1989_s18   ;;  %s1693_s17 = sphi %s1737_s17, %s1988_s17   ;;  %s1689_s16 = sphi %s1735_s16, %s1987_s16   ;;  %s1685_s15 = sphi %s1733_s15, %s1986_s15  }
   0x5   : > { %s1758_s21 = sadd.s32 1, %s1697_s18   ;;  %s119_s22 = sadd.s32 1, %s1693_s17 }
   0x6   : > { %s116_s23 = ssub.s32 %s1697_s18, %s1758_s21  ;;  %p129_p0 = scmp.ne.s32.totalorder %s1693_s17, %s1689_s16 }
   0x7   : > { %p117_p1 = scmp.eq.s32.totalorder %s116_s23, 0  ;;  %p130_p2 = scmp.eq.s32.totalorder %s1754_s19, 1 }
   0x8   : > { %p135_p3 = scmp.ne.s32.totalorder %s1689_s16, %s1685_s15  ;;  %p136_p4 = scmp.eq.s32.totalorder %s1267_s20, 1 }
   0x9   : > { %s1769_s24 = scalar_select %p117_p1, %s1693_s17, %s119_s22  }
   0xa   : > { %p1771_p5 = por %p130_p2, %p129_p0  ;;  %p1775_p6 = por %p136_p4, %p135_p3 }
   0xb   : > { %p1268_p7 = scmp.ge.s32.totalorder %s1697_s18, 1  ;;  %p143_p8 = scmp.lt.s32.totalorder %s1697_s18, 3 }
   0xc   : > { %s1975_s25 = scalar_select %p1771_p5, 1, 0 }
   0xd   : > { %s1976_s26 = scalar_select %p1775_p6, 1, 0 }
   0xe   : > { %p1972_p9 = scmp.eq.s32.totalorder %s1754_s19, 0  ;;  %p1782_p10 = pnand %p1268_p7, %p143_p8 }
   0xf   : > { %s1699_s28 = smov [#allocation2]   ;;  %s1603_s7 = scalar_lea.hbm %s1969_s2, 3072 }
  0x10   : > { %s1977_s27 = scalar_select %p1782_p10, 1, 0 }
  0x11   : > { %s155_s29 = sshll.u32 %s1699_s28, 4  ;;  %p1511_p11 = pneg %p1782_p10  ;;  %s156_s29 = int_to_ptr.vmem [resolvable:$true] %s155_s29 }
  0x12   : > { %p1604_p13 = scmp.ne.s32.totalorder %s1969_s2, %s1603_s7  ;;  %p1610_p3 = scmp.lt.u32.totalorder %s1603_s7, %s1969_s2 }
  0x13   : > { %p1790_p12 = pnand %p1972_p9, %p1511_p11 }
  0x15   : > { %p1605_p0 = pneg %p1790_p12 }
  0x17   : > { %p1606_p1 = pnand %p1605_p0, %p1604_p13 }
  0x19   : > { %p1607_p2 = pneg %p1606_p1 }
  0x1b   : > { %p1612_p4 = pnand %p1610_p3, %p1607_p2 }
  0x1d   : > { %1615 = shalt.err (!%p1612_p4)
}
  0x1e   : > { %s1616_s12 = scalar_lea.vmem %s156_s29, 3072  ;;  %p1624_p9 = scmp.lt.s32.totalorder %s156_s29, %s156_s29 }
  0x1f   : > { %p1617_p7 = scmp.ne.s32.totalorder %s156_s29, %s1616_s12  ;;  %p1625_p6 = scmp.lt.s32.totalorder %s1616_s12, %s1616_s12 }
  0x21   : > { %p1619_p8 = pnand %p1617_p7, %p1605_p0  ;;  %p1626_p5 = por %p1625_p6, %p1624_p9 }
  0x23   : > { %p1620_p11 = pneg %p1619_p8 }
  0x25   : > { %p1627_p10 = pnand %p1626_p5, %p1620_p11 }
  0x27   : > { %1630 = shalt.err (!%p1627_p10)
}
  0x28   : > { %s1700_s13 = smov 128   ;;  %s1701_s14 = smov 8  }
  0x29   : > { %1514 = dma.hbm_to_vmem [thread:$0]  (!%p1790_p12), %s1969_s2, 3072, %s156_s29, [#allocation3], %s1700_s13, %s1700_s13, %s1701_s14  }
  0x2a   : > { %p1979_p13 = scmp.ne.s32.totalorder %s1977_s27, 0 }
  0x2b   : > { %p1980_p1 = scmp.eq.s32.totalorder (!%p1979_p13), %s1754_s19, 0 }
  0x2c   : > { %190 = sbr.rel (%p1979_p13) target bundleno = 2894 (0xb4e), region = 36 }
  0x33   : > { %1676 = dma.done.wait (%p1980_p1), [#allocation3], 3072   ;;  %p1981_p0 = pmov %p1980_p1 }
  0x34   : > { %p221_p5 = scmp.lt.s32.totalorder %s1754_s19, 1  ;;  %v1702_v0 = vmov 127   ;;  %vm262_vm0 = vcmask 1042432   ;;  %vm255_vm1 = vcmask 23552   ;;  %v236_v1 = vld [vmem:[#allocation2] sm:$0xff]  ;;  %vm347_vm2 = vcmask 7168  }
  0x35   : > { %1678 = vsyncadd (%p1981_p0), [#allocation3], 4294964224  ;;  %1568 = vset.pattern.permute.xlu1 %v1702_v0  ;;  %1567 = vset.pattern.permute.xlu0 %v1702_v0  ;;  %v1703_v6 = vmov 1.0   ;;  %s1704_s5 = smov 2   ;;  %vm450_vm6 = vcmask 130048   ;;  %v238_v40 = vld [vmem:[#allocation2 + $0x40] sm:$0xff]  ;;  %v556_v53 = vlaneseq }
  0x36   : > { %s1818_s23 = scalar_select %p221_p5, %s1754_s19, 1  ;;  %1358 = vmatprep.subr.msk.mxu0 %vm262_vm0, %v236_v1  ;;  %1367 = vmatprep.mubr.msk.f32.mxu1 %vm347_vm2, %v1703_v6  ;;  %vm1831_vm3 = vmpackc.low %vm347_vm2, %vm347_vm2  ;;  %v239_v41 = vld [vmem:[#allocation2 + $0x48] sm:$0xff]  ;;  %v240_v42 = vld [vmem:[#allocation2 + $0x50] sm:$0xff]  ;;  %vm568_vm11 = vcmask 523264  }
  0x37   : > { %1359 = vmatpush3.msk.msra.mxu0 %vm262_vm0, %v236_v1  ;;  %v1453_v43 = vpack.c.bf16 %v239_v41, %v238_v40  ;;  %v241_v44 = vld [vmem:[#allocation2 + $0x58] sm:$0xff]  ;;  %v242_v46 = vld [vmem:[#allocation2 + $0x60] sm:$0xff]  ;;  %v243_v47 = vld [vmem:[#allocation2 + $0x68] sm:$0xff]  ;;  %v1864_v55 = vshrl.u32 %v556_v53, 7  ;;  %s218_s11 = sand.u32 1, %s1689_s16   ;;  %s1310_s20 = sshll.u32 %s1754_s19, 8 }
  0x38   : > { %s1308_s28 = sshll.u32 %s1818_s23, 4  ;;  %v1457_v45 = vpack.c.bf16 %v241_v44, %v240_v42  ;;  %v1461_v48 = vpack.c.bf16 %v243_v47, %v242_v46  ;;  %v244_v49 = vld [vmem:[#allocation2 + $0x70] sm:$0xff]  ;;  %v245_v50 = vld [vmem:[#allocation2 + $0x78] sm:$0xff]  ;;  %v1870_v57 = vld [vmem:[%s1970_s3] sm:$0x7]  ;;  %s1273_s12 = sshll.u32 %s218_s11, 4 }
  0x39   : > { %s230_s30 = scalar_lea.vmem %s1968_s1, %s1308_s28  ;;  %s225_s8 = scalar_lea.vmem %s1967_s0, %s1308_s28  ;;  %v1465_v51 = vpack.c.bf16 %v245_v50, %v244_v49  ;;  %v558_v56 = vsub.s32 0, %v1864_v55  ;;  %v248_v44 = vld [vmem:[#allocation2 + $0x88] sm:$0xff]  ;;  %v250_v47 = vld [vmem:[#allocation2 + $0x98] sm:$0xff]  ;;  %v251_v49 = vld [vmem:[#allocation2 + $0xa0] sm:$0xff] }
  0x3a   : > { %v233_v2 = vld [vmem:[%s230_s30] sm:$0xff]  ;;  %v234_v3 = vld [vmem:[%s230_s30 + $0x8] sm:$0xff]  ;;  %v254_v53 = vld [vmem:[#allocation2 + $0xb8] sm:$0xff]  ;;  %s220_s13 = scalar_lea.vmem [#allocation5], %s1273_s12  ;;  %s1924_s28 = scalar_lea.hbm %s1971_s4, %s1310_s20 }
  0x3b   : > { %1360 = vmatprep.mubr.msk.f32.mxu0 %vm255_vm1, %v233_v2  ;;  %v1848_v16 = vld [vmem:[%s225_s8 + $0x8] sm:$0xff]  ;;  %v1850_v20 = vld [vmem:[%s225_s8] sm:$0xff]  ;;  %v559_v58 = vrot.slane %v1870_v57, %v558_v56  ;;  %s1181_s14 = sshll.u32 %s220_s13, 4  ;;  %s1926_s27 = scalar_lea.sflag [#allocation4], %s218_s11  ;;  %s1919_s14 = int_to_ptr.vmem [resolvable:$true] %s1181_s14 }
  0x3c   : > { %1361 = vmatmul.mubr.msk.f32.vlgmr.msra.gmra.mrb[0].mxu0 %vm255_vm1, %v234_v3  ;;  %vm447_vm5 = vcmp.gt.f32.partialorder %v1848_v16, 0.0  ;;  %vm446_vm8 = vcmp.gt.f32.partialorder %v1850_v20, 0.0  ;;  %v252_v50 = vld [vmem:[#allocation2 + $0xa8] sm:$0xff]  ;;  %s1631_s19 = scalar_lea.vmem %s1919_s14, 256  ;;  %p1984_p9 = scmp.ne.s32.totalorder %s1975_s25, 0 }
  0x3d   : > { %p1632_p6 = scmp.ne.s32.totalorder %s1919_s14, %s1631_s19  ;;  %s1705_s29 = smov [#allocation5]  }
  0x3e   : > { %s1635_s30 = sshll.u32 %s1705_s29, 4  ;;  %s1636_s30 = int_to_ptr.vmem [resolvable:$false] %s1635_s30 }
  0x3f   : > { %p1633_p10 = pnand %p1632_p6, %p1984_p9  ;;  %p1638_p2 = scmp.lt.s32.totalorder %s1919_s14, %s1636_s30 }
  0x41   : > { %p1634_p12 = pneg %p1633_p10 }
 0x10f   : > { %v1362_v4 = vpop.f32.mrb[0].mxu0 }
 0x110   : > { %435 = vperm.xlu1 %1568, %v1362_v4   ;;  %v332_v5 = vpop.f32.mrb[1].mxu0 }
 0x111   : > { %v1449_v7 = vpack.c.bf16 %v1362_v4, %v332_v5  ;;  %v1562_v8 = vpack.i.bf16 %v1362_v4, %v332_v5 }
 0x113   : > { %1563 = vrot.lane.b32.xlu0 %v1562_v8, %s1704_s5  ;;  %1450 = vmatprep.subr.bf16.mxu0 %v1449_v7 }
 0x114   : > { %1452 = vmatpush3.bf16.msra.mxu0 %v1449_v7 }
 0x115   : > { %1454 = vmatprep.subr.bf16.mxu0 %v1453_v43 }
 0x117   : > { %431 = vperm.xlu0 %1567, %v332_v5  }
 0x185   : > { %v1564_v9 = vpop.permute.xlu0 %1563 }
 0x186   : > { %v1566_v10 = vunpack.i.h.bf16 %v1564_v9  ;;  %v1565_v11 = vunpack.i.l.bf16 %v1564_v9 }
 0x188   : > { %v1443_v13 = vpack.c.bf16 %v1566_v10, %v1565_v11 }
 0x18a   : > { %1445 = vmatprep.subr.msk.bf16.mxu1 %vm1831_vm3, %v1443_v13 }
 0x18b   : > { %1448 = vmatpush3.bf16.xpose.msk.msra.mxu1 %vm1831_vm3, %v1443_v13 }
 0x18f   : > { %v436_v14 = vpop.permute.xlu1 %435 }
 0x192   : > { %1368 = vmatmul.mubr.msk.f32.vlgmr.msra.gmra.mrb[0].mxu1 %vm347_vm2, %v1703_v6 }
 0x193   : > { %1400 = vmatprep.mubr.msk.f32.mxu1 %vm347_vm2, %v1703_v6 }
 0x196   : > { %v432_v17 = vpop.permute.xlu0 %431 }
 0x265   : > { %v1369_v15 = vpop.f32.mrb[0].mxu1 }
 0x266   : > { %v439_v18 = vadd.f32 %v1369_v15, %v436_v14  ;;  %v421_v19 = vpop.f32.mrb[1].mxu1 }
 0x267   : > { %v438_v21 = vadd.f32 %v432_v17, %v421_v19 }
 0x268   : > { %v443_v22 = vmul.f32 0.2, %v439_v18  ;;  %vm441_vm4 = vcmp.ge.f32.partialorder %v439_v18, 0.0 }
 0x269   : > { %v442_v23 = vmul.f32 0.2, %v438_v21  ;;  %vm440_vm7 = vcmp.ge.f32.partialorder %v438_v21, 0.0 }
 0x26a   : > { %v445_v24 = vsel %vm441_vm4, %v439_v18, %v443_v22 }
 0x26b   : > { %v449_v25 = vsel %vm447_vm5, %v445_v24, -1e+30  ;;  %v444_v26 = vsel %vm440_vm7, %v438_v21, %v442_v23 }
 0x26c   : > { %v454_v27 = vsel %vm450_vm6, %v449_v25, -inf  ;;  %v448_v28 = vsel %vm446_vm8, %v444_v26, -1e+30 }
 0x26d   : > { %455 = vmax.xlane.f32.xlu0 %v454_v27  ;;  %v451_v29 = vsel %vm450_vm6, %v448_v28, -inf }
 0x26e   : > { %452 = vmax.xlane.f32.xlu1 %v451_v29 }
 0x2fa   : > { %v456_v30 = vpop.xlane.xlu0 %455 }
 0x2fb   : > { %v458_v31 = vsub.f32 %v449_v25, %v456_v30  ;;  %v453_v32 = vpop.xlane.xlu1 %452 }
 0x2fc   : > { %v457_v33 = vsub.f32 %v448_v28, %v453_v32 }
 0x2fd   : > { %v461_v34 = vmul.f32 1.442695, %v458_v31 }
 0x2fe   : > { %v459_v35 = vmul.f32 1.442695, %v457_v33 }
 0x2ff   : > { %1579 = vpow2.f32 %v461_v34 }
 0x300   : > { %1581 = vpow2.f32 %v459_v35 }
 0x309   : > { %v1580_v36 = vpop.eup %1579 }
 0x30a   : > { %v1582_v37 = vpop.eup %1581  ;;  %v466_v38 = vsel %vm450_vm6, %v1580_v36, 0.0 }
 0x30b   : > { %467 = vadd.xlane.f32.xlu0 %v466_v38  ;;  %1374 = vmatprep.mubr.msk.f32.mxu0 %vm450_vm6, %v1582_v37  ;;  %v463_v39 = vsel %vm450_vm6, %v1582_v37, 0.0 }
 0x30c   : > { %1375 = vmatmul.mubr.msk.f32.vlgmr.msra.gmra.mrb[2].mxu0 %vm450_vm6, %v1580_v36  ;;  %464 = vadd.xlane.f32.xlu1 %v463_v39 }
 0x30d   : > { %1456 = vmatpush3.bf16.msra.mxu0 %v1453_v43  ;;  %v247_v43 = vld [vmem:[#allocation2 + $0x80] sm:$0xff] }
 0x30e   : > { %1458 = vmatprep.subr.bf16.mxu0 %v1457_v45  ;;  %v1479_v46 = vpack.c.bf16 %v248_v44, %v247_v43  ;;  %v1161_v43 = vsub.s32 2, %v1864_v55 }
 0x310   : > { %v1162_v44 = vrot.slane %v1870_v57, %v1161_v43 }
 0x311   : > { %1460 = vmatpush3.bf16.msra.mxu0 %v1457_v45  ;;  %v249_v45 = vld [vmem:[#allocation2 + $0x90] sm:$0xff] }
 0x312   : > { %1462 = vmatprep.subr.bf16.mxu0 %v1461_v48 }
 0x315   : > { %1464 = vmatpush3.bf16.msra.mxu0 %v1461_v48  ;;  %v1483_v48 = vpack.c.bf16 %v250_v47, %v249_v45 }
 0x316   : > { %1466 = vmatprep.subr.bf16.mxu0 %v1465_v51 }
 0x319   : > { %1468 = vmatpush3.bf16.msra.mxu0 %v1465_v51  ;;  %v1487_v51 = vpack.c.bf16 %v252_v50, %v251_v49 }
 0x398   : > { %v468_v52 = vpop.xlane.xlu0 %467 }
 0x399   : > { %v465_v54 = vpop.xlane.xlu1 %464  ;;  %1583 = vrcp.f32 %v468_v52  ;;  %v253_v52 = vld [vmem:[#allocation2 + $0xb0] sm:$0xff] }
 0x39a   : > { %1585 = vrcp.f32 %v465_v54  ;;  %v1491_v54 = vpack.c.bf16 %v254_v53, %v253_v52 }
 0x3a3   : > { %v1584_v59 = vpop.eup %1583 }
 0x3a4   : > { %v1586_v61 = vpop.eup %1585 }
 0x3df   : > { %v1376_v60 = vpop.f32.mrb[2].mxu0 }
 0x3e0   : > { %v555_v62 = vmul.f32 %v1584_v59, %v1376_v60  ;;  %v545_v63 = vpop.f32.mrb[3].mxu0  ;;  %v860_v59 = vsub.s32 1, %v1864_v55 }
 0x3e1   : > { %v554_v0 = vmul.f32 %v1586_v61, %v545_v63 }
 0x3e2   : > { %v561_v1 = vadd.f32 %v559_v58, %v555_v62  ;;  %v861_v60 = vrot.slane %v1870_v57, %v860_v59 }
 0x3e3   : > { %v560_v2 = vadd.f32 %v559_v58, %v554_v0 }
 0x3e4   : > { %v565_v3 = vmul.f32 0.01, %v561_v1  ;;  %vm563_vm9 = vcmp.ge.f32.partialorder %v561_v1, 0.0 }
 0x3e5   : > { %v564_v4 = vmul.f32 0.01, %v560_v2  ;;  %vm562_vm10 = vcmp.ge.f32.partialorder %v560_v2, 0.0 }
 0x3e6   : > { %v567_v7 = vsel %vm563_vm9, %v561_v1, %v565_v3 }
 0x3e7   : > { %v566_v5 = vsel %vm562_vm10, %v560_v2, %v564_v4 }
 0x3e8   : > { %1393 = vmatprep.mubr.msk.f32.mxu0 %vm568_vm11, %v566_v5 }
 0x3e9   : > { %1394 = vmatmul.mubr.msk.f32.vlgmr.msra.gmra.mrb[4].mxu0 %vm568_vm11, %v567_v7 }
 0x3ea   : > { %1433 = vmatprep.mubr.msk.f32.mxu0 %vm347_vm2, %v1703_v6 }
 0x4bc   : > { %v1395_v8 = vpop.f32.mrb[4].mxu0 }
 0x4bd   : > { %v641_v9 = vpop.f32.mrb[5].mxu0 }
 0x4be   : > { %v1569_v10 = vpack.i.bf16 %v1395_v8, %v641_v9  ;;  %v1475_v11 = vpack.c.bf16 %v1395_v8, %v641_v9  ;;  %736 = vperm.xlu0 %1567, %v641_v9  }
 0x4c0   : > { %1570 = vrot.lane.b32.xlu1 %v1569_v10, %s1704_s5 }
 0x4c4   : > { %740 = vperm.xlu1 %1568, %v1395_v8  }
 0x532   : > { %v1571_v13 = vpop.permute.xlu1 %1570 }
 0x533   : > { %v1573_v14 = vunpack.i.h.bf16 %v1571_v13  ;;  %v1572_v15 = vunpack.i.l.bf16 %v1571_v13 }
 0x535   : > { %v1469_v17 = vpack.c.bf16 %v1573_v14, %v1572_v15 }
 0x537   : > { %1471 = vmatprep.subr.msk.bf16.mxu1 %vm1831_vm3, %v1469_v17 }
 0x538   : > { %1474 = vmatpush3.bf16.xpose.msk.msra.mxu1 %vm1831_vm3, %v1469_v17 }
 0x539   : > { %1476 = vmatprep.subr.bf16.mxu1 %v1475_v11 }
 0x53d   : > { %v737_v21 = vpop.permute.xlu0 %736 }
 0x53f   : > { %1401 = vmatmul.mubr.msk.f32.vlgmr.msra.gmra.mrb[2].mxu1 %vm347_vm2, %v1703_v6 }
 0x540   : > { %1478 = vmatpush3.bf16.msra.mxu1 %v1475_v11 }
 0x541   : > { %1480 = vmatprep.subr.bf16.mxu1 %v1479_v46 }
 0x543   : > { %v741_v18 = vpop.permute.xlu1 %740 }
 0x612   : > { %v1402_v19 = vpop.f32.mrb[2].mxu1 }
 0x613   : > { %v744_v22 = vadd.f32 %v1402_v19, %v741_v18  ;;  %v726_v23 = vpop.f32.mrb[3].mxu1 }
 0x614   : > { %v743_v24 = vadd.f32 %v737_v21, %v726_v23 }
 0x615   : > { %v748_v25 = vmul.f32 0.2, %v744_v22  ;;  %vm746_vm12 = vcmp.ge.f32.partialorder %v744_v22, 0.0 }
 0x616   : > { %v747_v26 = vmul.f32 0.2, %v743_v24  ;;  %vm745_vm13 = vcmp.ge.f32.partialorder %v743_v24, 0.0 }
 0x617   : > { %v750_v27 = vsel %vm746_vm12, %v744_v22, %v748_v25 }
 0x618   : > { %v752_v28 = vsel %vm447_vm5, %v750_v27, -1e+30  ;;  %v749_v29 = vsel %vm745_vm13, %v743_v24, %v747_v26 }
 0x619   : > { %v756_v30 = vsel %vm450_vm6, %v752_v28, -inf  ;;  %v751_v31 = vsel %vm446_vm8, %v749_v29, -1e+30 }
 0x61a   : > { %757 = vmax.xlane.f32.xlu0 %v756_v30  ;;  %v753_v32 = vsel %vm450_vm6, %v751_v31, -inf }
 0x61b   : > { %754 = vmax.xlane.f32.xlu1 %v753_v32 }
 0x6a7   : > { %v758_v33 = vpop.xlane.xlu0 %757 }
 0x6a8   : > { %v760_v34 = vsub.f32 %v752_v28, %v758_v33  ;;  %v755_v35 = vpop.xlane.xlu1 %754 }
 0x6a9   : > { %v759_v36 = vsub.f32 %v751_v31, %v755_v35 }
 0x6aa   : > { %v763_v37 = vmul.f32 1.442695, %v760_v34 }
 0x6ab   : > { %v761_v38 = vmul.f32 1.442695, %v759_v36 }
 0x6ac   : > { %1587 = vpow2.f32 %v763_v37 }
 0x6ad   : > { %1589 = vpow2.f32 %v761_v38 }
 0x6b6   : > { %v1588_v39 = vpop.eup %1587 }
 0x6b7   : > { %v1590_v40 = vpop.eup %1589  ;;  %v768_v41 = vsel %vm450_vm6, %v1588_v39, 0.0 }
 0x6b8   : > { %769 = vadd.xlane.f32.xlu1 %v768_v41  ;;  %1407 = vmatprep.mubr.msk.f32.mxu1 %vm450_vm6, %v1590_v40  ;;  %v765_v42 = vsel %vm450_vm6, %v1590_v40, 0.0 }
 0x6b9   : > { %766 = vadd.xlane.f32.xlu0 %v765_v42  ;;  %1408 = vmatmul.mubr.msk.f32.vlgmr.msra.gmra.mrb[4].mxu1 %vm450_vm6, %v1588_v39 }
 0x6ba   : > { %1482 = vmatpush3.bf16.msra.mxu1 %v1479_v46 }
 0x6bb   : > { %1484 = vmatprep.subr.bf16.mxu1 %v1483_v48 }
 0x6be   : > { %1486 = vmatpush3.bf16.msra.mxu1 %v1483_v48 }
 0x6bf   : > { %1488 = vmatprep.subr.bf16.mxu1 %v1487_v51 }
 0x6c2   : > { %1490 = vmatpush3.bf16.msra.mxu1 %v1487_v51 }
 0x6c3   : > { %1492 = vmatprep.subr.bf16.mxu1 %v1491_v54 }
 0x6c6   : > { %1494 = vmatpush3.bf16.msra.mxu1 %v1491_v54 }
 0x745   : > { %v770_v56 = vpop.xlane.xlu1 %769 }
 0x746   : > { %v767_v58 = vpop.xlane.xlu0 %766  ;;  %1591 = vrcp.f32 %v770_v56 }
 0x747   : > { %1593 = vrcp.f32 %v767_v58 }
 0x750   : > { %v1592_v61 = vpop.eup %1591 }
 0x751   : > { %v1594_v63 = vpop.eup %1593 }
 0x78c   : > { %v1409_v62 = vpop.f32.mrb[4].mxu1 }
 0x78d   : > { %v857_v0 = vmul.f32 %v1592_v61, %v1409_v62  ;;  %v847_v1 = vpop.f32.mrb[5].mxu1 }
 0x78e   : > { %v856_v2 = vmul.f32 %v1594_v63, %v847_v1 }
 0x78f   : > { %v863_v3 = vadd.f32 %v861_v60, %v857_v0 }
 0x790   : > { %v862_v4 = vadd.f32 %v861_v60, %v856_v2 }
 0x791   : > { %v867_v5 = vmul.f32 0.01, %v863_v3  ;;  %vm865_vm14 = vcmp.ge.f32.partialorder %v863_v3, 0.0 }
 0x792   : > { %v866_v7 = vmul.f32 0.01, %v862_v4  ;;  %vm864_vm15 = vcmp.ge.f32.partialorder %v862_v4, 0.0 }
 0x793   : > { %v869_v9 = vsel %vm865_vm14, %v863_v3, %v867_v5 }
 0x794   : > { %v868_v8 = vsel %vm864_vm15, %v862_v4, %v866_v7 }
 0x795   : > { %1426 = vmatprep.mubr.msk.f32.mxu1 %vm568_vm11, %v868_v8 }
 0x796   : > { %1427 = vmatmul.mubr.msk.f32.vlgmr.msra.gmra.mrb[6].mxu1 %vm568_vm11, %v869_v9 }
 0x869   : > { %v1428_v10 = vpop.f32.mrb[6].mxu1 }
 0x86a   : > { %v942_v11 = vpop.f32.mrb[7].mxu1 }
 0x86b   : > { %v1574_v13 = vpack.i.bf16 %v1428_v10, %v942_v11  ;;  %v1501_v14 = vpack.c.bf16 %v1428_v10, %v942_v11  ;;  %1037 = vperm.xlu1 %1568, %v942_v11  }
 0x86d   : > { %1575 = vrot.lane.b32.xlu0 %v1574_v13, %s1704_s5  ;;  %s1637_s5 = scalar_lea.vmem %s1636_s30, 512 }
 0x86e   : > { %p1639_p3 = scmp.lt.s32.totalorder %s1637_s5, %s1631_s19 }
 0x86f   : > { %1041 = vperm.xlu1 %1568, %v1428_v10  }
 0x870   : > { %p1640_p4 = por %p1639_p3, %p1638_p2 }
 0x872   : > { %p1641_p7 = pnand %p1640_p4, %p1634_p12 }
 0x8df   : > { %v1576_v15 = vpop.permute.xlu0 %1575 }
 0x8e0   : > { %v1578_v17 = vunpack.i.h.bf16 %v1576_v15  ;;  %v1577_v18 = vunpack.i.l.bf16 %v1576_v15 }
 0x8e2   : > { %v1495_v19 = vpack.c.bf16 %v1578_v17, %v1577_v18 }
 0x8e4   : > { %1497 = vmatprep.subr.msk.bf16.mxu0 %vm1831_vm3, %v1495_v19 }
 0x8e5   : > { %1500 = vmatpush3.bf16.xpose.msk.msra.mxu0 %vm1831_vm3, %v1495_v19 }
 0x8e6   : > { %1502 = vmatprep.subr.bf16.mxu0 %v1501_v14 }
 0x8ea   : > { %v1038_v21 = vpop.permute.xlu1 %1037 }
 0x8ec   : > { %1434 = vmatmul.mubr.msk.f32.vlgmr.msra.gmra.mrb[6].mxu0 %vm347_vm2, %v1703_v6 }
 0x8ed   : > { %1504 = vmatpush3.bf16.msra.mxu0 %v1501_v14 }
 0x8ee   : > { %v1042_v22 = vpop.permute.xlu1 %1041 }
 0x9bf   : > { %v1435_v23 = vpop.f32.mrb[6].mxu0 }
 0x9c0   : > { %v1045_v24 = vadd.f32 %v1435_v23, %v1042_v22  ;;  %v1027_v25 = vpop.f32.mrb[7].mxu0 }
 0x9c1   : > { %v1044_v26 = vadd.f32 %v1038_v21, %v1027_v25 }
 0x9c2   : > { %v1049_v27 = vmul.f32 0.2, %v1045_v24  ;;  %vm1047_vm0 = vcmp.ge.f32.partialorder %v1045_v24, 0.0 }
 0x9c3   : > { %v1048_v28 = vmul.f32 0.2, %v1044_v26  ;;  %vm1046_vm1 = vcmp.ge.f32.partialorder %v1044_v26, 0.0 }
 0x9c4   : > { %v1051_v29 = vsel %vm1047_vm0, %v1045_v24, %v1049_v27 }
 0x9c5   : > { %v1053_v12 = vsel %vm447_vm5, %v1051_v29, -1e+30  ;;  %v1050_v30 = vsel %vm1046_vm1, %v1044_v26, %v1048_v28 }
 0x9c6   : > { %v1057_v31 = vsel %vm450_vm6, %v1053_v12, -inf  ;;  %v1052_v6 = vsel %vm446_vm8, %v1050_v30, -1e+30 }
 0x9c7   : > { %1058 = vmax.xlane.f32.xlu1 %v1057_v31  ;;  %v1054_v32 = vsel %vm450_vm6, %v1052_v6, -inf }
 0x9c8   : > { %1055 = vmax.xlane.f32.xlu0 %v1054_v32 }
 0xa54   : > { %v1059_v33 = vpop.xlane.xlu1 %1058 }
 0xa55   : > { %v1061_v34 = vsub.f32 %v1053_v12, %v1059_v33  ;;  %v1056_v35 = vpop.xlane.xlu0 %1055 }
 0xa56   : > { %v1060_v36 = vsub.f32 %v1052_v6, %v1056_v35 }
 0xa57   : > { %v1064_v37 = vmul.f32 1.442695, %v1061_v34 }
 0xa58   : > { %v1062_v38 = vmul.f32 1.442695, %v1060_v36 }
 0xa5a   : > { %1595 = vpow2.f32 %v1062_v38 }
 0xa5b   : > { %1597 = vpow2.f32 %v1064_v37 }
 0xa64   : > { %v1596_v16 = vpop.eup %1595 }
 0xa65   : > { %v1598_v39 = vpop.eup %1597  ;;  %1440 = vmatprep.mubr.msk.f32.mxu0 %vm450_vm6, %v1596_v16  ;;  %v1066_v20 = vsel %vm450_vm6, %v1596_v16, 0.0 }
 0xa66   : > { %1067 = vadd.xlane.f32.xlu0 %v1066_v20  ;;  %1441 = vmatmul.mubr.msk.f32.vlgmr.msra.gmra.mrb[8].mxu0 %vm450_vm6, %v1598_v39  ;;  %v1069_v40 = vsel %vm450_vm6, %v1598_v39, 0.0 }
 0xa6a   : > { %1070 = vadd.xlane.f32.xlu0 %v1069_v40 }
 0xaf3   : > { %v1068_v41 = vpop.xlane.xlu0 %1067 }
 0xaf7   : > { %v1071_v42 = vpop.xlane.xlu0 %1070 }
 0xaf8   : > { %1599 = vrcp.f32 %v1071_v42 }
 0xaf9   : > { %1601 = vrcp.f32 %v1068_v41 }
 0xb02   : > { %v1600_v45 = vpop.eup %1599 }
 0xb03   : > { %v1602_v47 = vpop.eup %1601 }
 0xb39   : > { %v1442_v46 = vpop.f32.mrb[8].mxu0 }
 0xb3a   : > { %v1158_v48 = vmul.f32 %v1600_v45, %v1442_v46  ;;  %v1148_v49 = vpop.f32.mrb[9].mxu0 }
 0xb3b   : > { %v1157_v50 = vmul.f32 %v1602_v47, %v1148_v49 }
 0xb3c   : > { %v1164_v51 = vadd.f32 %v1162_v44, %v1158_v48 }
 0xb3d   : > { %v1163_v55 = vadd.f32 %v1162_v44, %v1157_v50 }
 0xb3e   : > { %1166 = vst [vmem:[%s220_s13 + $0x8] sm:$0xff] %v1164_v51 }
 0xb3f   : > { %1165 = vst [vmem:[%s220_s13] sm:$0xff] %v1163_v55 }
 0xb40   : > { %1644 = shalt.err (!%p1641_p7)
}
 0xb41   : > { %s1645_s6 = scalar_lea.hbm %s1924_s28, 256  ;;  %s1649_s9 = scalar_lea.hbm %s1971_s4, 512 }
 0xb42   : > { %p1646_p8 = scmp.ne.s32.totalorder %s1924_s28, %s1645_s6  ;;  %p1650_p1 = scmp.lt.u32.totalorder %s1924_s28, %s1971_s4 }
 0xb43   : > { %p1651_p0 = scmp.lt.u32.totalorder %s1649_s9, %s1645_s6  ;;  %p1653_p6 = scmp.lt.u32.totalorder %s1645_s6, %s1924_s28 }
 0xb44   : > { %p1647_p11 = pnand %p1646_p8, %p1984_p9 }
 0xb45   : > { %p1652_p5 = por %p1651_p0, %p1650_p1 }
 0xb46   : > { %p1648_p13 = pneg %p1647_p11 }
 0xb47   : > { %p1654_p10 = por %p1653_p6, %p1652_p5 }
 0xb49   : > { %p1655_p12 = pnand %p1654_p10, %p1648_p13 }
 0xb4b   : > { %1658 = shalt.err (!%p1655_p12)
}
 0xb4c   : > { %s1706_s12 = smov 128   ;;  %s1707_s13 = smov 8  }
 0xb4d   : > { %1509 = dma.vmem_to_hbm [thread:$0]  (%p1984_p9), %s1919_s14, 256, %s1924_s28, %s1926_s27, %s1706_s12, %s1706_s12, %s1707_s13  }
 0xb4e PF: > { %p1521_p2 = scmp.ge.s32.totalorder %s1697_s18, 2  ;;  %s1196_s20 = sand.u32 1, %s1685_s15  }
 0xb4f   : > { %p1985_p3 = scmp.ne.s32.totalorder %s1976_s26, 0  ;;  %s1197_s22 = scalar_lea.sflag [#allocation4], %s1196_s20 }
 0xb51   : > { %p1516_p4 = pnand %p1521_p2, %p1985_p3 }
 0xb53   : > { %1680 = dma.done.wait (!%p1516_p4), %s1197_s22, 256  }
 0xb54   : > { %1682 = vsyncadd (!%p1516_p4), %s1197_s22, 4294967040  ;;  %p15_p7 = scmp.ge.s32.totalorder %s1758_s21, 4   ;;  %s1986_s15 = smov %s1689_s16 }
 0xb55   : > { %s1987_s16 = smov %s1693_s17  ;;  %s1988_s17 = smov %s1769_s24 }
 0xb56   : > { %s1989_s18 = smov %s1758_s21  ;;  %17 = sbr.rel (!%p15_p7) target bundleno = 4 (0x4), region = 81 }
 0xb5d   :  { %1202 = vsyncpa [#allocation3], 1 }
 0xb5e   :  { %1204 = vsyncpa [#allocation3 + $0x1], 1 }
 0xb5f   :  { %1205 = vsyncpa [#allocation4], 1 }
 0xb60   :  { %1207 = vsyncpa [#allocation4 + $0x1], 1 }

</bundles_post_ra>
